<compile_context>
chip_gen: v7x
topology: tpu7x:2x2x1
jax: 0.10.0
libtpu: 0.0.40
codegen_flags: <defaults>
</compile_context>

<pallas_src>
import functools

import jax
import jax.numpy as jnp
from jax.experimental import pallas as pl
from jax.experimental.pallas import tpu as pltpu


_XLA_FALLBACK_BYTES = 1 * 1024 * 1024   # below this, plain XLA wins
_LANE = 128                             # TPU lane width


def _round_up(a, b):
    return -(-a // b) * b


def _vmem_capacity_bytes():
    try:
        info = pltpu.get_tpu_info()
        cap = getattr(info, "vmem_capacity_bytes", None)
        if cap:
            return int(cap)
    except Exception:
        pass
    return 64 * 1024 * 1024  # assume the most VMEM-constrained part (v7x)


def _gap_kernel(x_ref, o_ref, acc_ref, *, inv_hw, hw_total, hw_blk, mask_hw):
    """x_ref: (bn, c_blk, hw_blk) tile of (N, C, H*W); o_ref: (bn, c_blk)."""
    k = pl.program_id(2)

    @pl.when(k == 0)
    def _():
        acc_ref[...] = jnp.zeros_like(acc_ref)

    x = x_ref[...]
    if mask_hw:
        # Zero lanes past the end of H*W in the partial last spatial block so
        # stale VMEM contents never enter the sum.
        lane = jax.lax.broadcasted_iota(jnp.int32, x.shape, x.ndim - 1)
        x = jnp.where(lane < (hw_total - k * hw_blk), x, jnp.zeros_like(x))

    # Accumulate in f32 without keeping a separate full-size f32 copy alive.
    acc_ref[...] += jnp.sum(x, axis=-1, dtype=jnp.float32)

    @pl.when(k == pl.num_programs(2) - 1)
    def _():
        o_ref[...] = (acc_ref[...] * jnp.float32(inv_hw)).astype(o_ref.dtype)


def _global_avg_pool_xla(x):
    return jnp.mean(x.astype(jnp.float32), axis=(2, 3)).astype(x.dtype)


def _global_avg_pool_pallas(x, *, block_bytes_override=None):
    """x: (N, C, H, W) -> (N, C) via mean over H, W (Pallas TPU kernel)."""
    N, C, H, W = x.shape
    HW = H * W
    # Free metadata reshape on contiguous NCHW: reduction axis becomes the
    # lane-mapped last dim.
    x3 = x.reshape(N, C, HW)

    itemsize = x.dtype.itemsize
    sub_mult = max(8, 32 // itemsize)        # sublane packing: 8 f32, 16 bf16, 32 int8

    vmem_cap = _vmem_capacity_bytes()
    budget = min(64 << 20, (3 * vmem_cap) // 4)   # v7x: 48 MiB, v5e/v6e: 64 MiB
    # 2 pipeline buffers per block (+ f32 reduce temp for sub-32-bit inputs).
    dup_factor = 2 + max(1, 4 // itemsize)
    if block_bytes_override is not None:
        target_blk = int(block_bytes_override)
    else:
        target_blk = max(512 * 1024, (budget * 7 // 10) // dup_factor)

    # --- choose block dims ---------------------------------------------------
    bn = N if N < 8 else 8
    c_base = C if C <= _LANE else _LANE
    hw_pad = _round_up(HW, _LANE)
    min_full_hw_bytes = bn * _round_up(c_base, sub_mult) * hw_pad * itemsize

    if min_full_hw_bytes <= target_blk:
        # Keep the whole spatial extent in one block; grow channels, then batch.
        hw_blk = HW
        if C <= _LANE:
            c_blk = C
        else:
            per_c128 = bn * _LANE * hw_pad * itemsize
            n128 = max(1, target_blk // per_c128)
            c_blk = C if n128 * _LANE >= C else n128 * _LANE
        c_pad = _round_up(c_blk, sub_mult)
        if c_blk == C and N > bn:
            grow = target_blk // max(1, c_pad * hw_pad * itemsize)
            bn_new = min(N, (grow // 8) * 8)
            if bn_new > bn:
                bn = bn_new
    else:
        # Large spatial map: tile H*W in lane-multiple chunks and accumulate
        # across the "arbitrary" grid axis.
        c_blk = c_base
        c_pad = _round_up(c_blk, sub_mult)
        per_lane128 = bn * c_pad * _LANE * itemsize
        n_lane = max(1, target_blk // per_lane128)
        hw_blk = n_lane * _LANE

    # Guarantee >=2 steps along a parallel axis when everything fits one block
    # (dual-TC participation on v7x; DMA/compute overlap on single-TC parts).
    if pl.cdiv(N, bn) * pl.cdiv(C, c_blk) == 1:
        if C >= 2 * _LANE:
            c_blk = _round_up(-(-C // 2), _LANE)
        elif N >= 16:
            bn = _round_up(-(-N // 2), 8)

    grid = (pl.cdiv(N, bn), pl.cdiv(C, c_blk), pl.cdiv(HW, hw_blk))
    mask_hw = (HW % hw_blk) != 0

    # --- VMEM budget from the *padded* footprint ------------------------------
    c_pad = _round_up(c_blk, sub_mult)
    hw_blk_pad = _round_up(hw_blk, _LANE)
    in_blk_bytes = bn * c_pad * hw_blk_pad * itemsize
    f32_tmp = 0 if itemsize >= 4 else bn * c_pad * hw_blk_pad * 4
    mask_tmp = bn * c_pad * hw_blk_pad * (4 + itemsize) if mask_hw else 0
    small = _round_up(bn, 8) * _round_up(c_blk, _LANE)
    vmem_needed = (2 * in_blk_bytes + f32_tmp + mask_tmp
                   + 2 * small * itemsize + small * 4)
    vmem_limit = int(min((3 * vmem_cap) // 4, 64 << 20,
                         max(32 << 20, int(1.5 * vmem_needed))))

    kernel = functools.partial(
        _gap_kernel,
        inv_hw=1.0 / float(HW),
        hw_total=HW,
        hw_blk=hw_blk,
        mask_hw=mask_hw,
    )

    return pl.pallas_call(
        kernel,
        out_shape=jax.ShapeDtypeStruct((N, C), x.dtype),
        grid_spec=pltpu.PrefetchScalarGridSpec(
            num_scalar_prefetch=0,
            grid=grid,
            in_specs=[pl.BlockSpec((bn, c_blk, hw_blk),
                                   lambda n, c, k: (n, c, k))],
            out_specs=pl.BlockSpec((bn, c_blk), lambda n, c, k: (n, c)),
            scratch_shapes=[pltpu.VMEM((bn, c_blk), jnp.float32)],
        ),
        compiler_params=pltpu.CompilerParams(
            dimension_semantics=("parallel", "parallel", "arbitrary"),
            vmem_limit_bytes=vmem_limit,
        ),
    )(x3)


def _global_avg_pool_single(x, *, allow_xla_fallback=True):
    N, C, H, W = x.shape
    if allow_xla_fallback:
        too_small = x.size * x.dtype.itemsize < _XLA_FALLBACK_BYTES
        lane_starved = (H * W) < _LANE   # masked lanes + launch overhead lose to XLA
        if too_small or lane_starved:
            return _global_avg_pool_xla(x)
    return _global_avg_pool_pallas(x)


def global_avg_pooling(inputs, concat=False, *, allow_xla_fallback=True):
    """Mirrors GlobalAvgPooling.forward.

    inputs: a jnp.ndarray (NCHW) or a tuple of them.
    Returns (N, C) array, or a tuple of (N, C_i) arrays (plus concat if requested).
    """
    if isinstance(inputs, tuple):
        outs = [
            _global_avg_pool_single(x, allow_xla_fallback=allow_xla_fallback)
            for x in inputs
        ]
        if concat:
            outs.append(jnp.concatenate(outs, axis=1))
        return tuple(outs)
    elif isinstance(inputs, jnp.ndarray):
        if concat:
            raise TypeError(
                "Inputs of GlobalAvgPooling with concat=True should be tuple"
            )
        return _global_avg_pool_single(inputs, allow_xla_fallback=allow_xla_fallback)
    else:
        raise TypeError("GlobalAvgPooling inputs should be tuple or jnp.ndarray")


if __name__ == "__main__":
    key = jax.random.PRNGKey(0)
    k1, k2, k3, k4, k5 = jax.random.split(key, 5)

    # 1) Pallas kernel directly at the module's nominal small shape (N=2, C=4, 16x16).
    x = jax.random.normal(k1, (2, 4, 16, 16), dtype=jnp.float32)
    out = jax.block_until_ready(_global_avg_pool_pallas(x))
    ref = jnp.mean(x, axis=(2, 3))
    assert out.shape == (2, 4)
    assert jnp.allclose(out, ref, atol=1e-5, rtol=1e-5)

    # 2) Multi-step grid (channels split for >=2 parallel steps), f32.
    z = jax.random.normal(k3, (16, 256, 16, 16), dtype=jnp.float32)
    out_z = jax.block_until_ready(_global_avg_pool_pallas(z))
    ref_z = jnp.mean(z, axis=(2, 3))
    assert out_z.shape == (16, 256)
    assert jnp.allclose(out_z, ref_z, atol=1e-5, rtol=1e-4)

    # 3) Forced spatial tiling + partial-lane masking path (HW=324, hw_blk=128).
    w = jax.random.normal(k4, (2, 4, 18, 18), dtype=jnp.float32)
    out_w = jax.block_until_ready(
        _global_avg_pool_pallas(w, block_bytes_override=8 * 1024))
    ref_w = jnp.mean(w, axis=(2, 3))
    assert out_w.shape == (2, 4)
    assert jnp.allclose(out_w, ref_w, atol=1e-5, rtol=1e-4)

    # 4) bf16 input: f32 accumulation, bf16 output.
    b = jax.random.normal(k5, (8, 256, 16, 16), dtype=jnp.bfloat16)
    out_b = jax.block_until_ready(_global_avg_pool_pallas(b))
    ref_b = jnp.mean(b.astype(jnp.float32), axis=(2, 3)).astype(jnp.bfloat16)
    assert out_b.shape == (8, 256)
    assert jnp.allclose(out_b.astype(jnp.float32), ref_b.astype(jnp.float32),
                        atol=2e-2, rtol=2e-2)

    # 5) Module-level wrapper: tuple path with concat (small tensors may take the
    #    XLA fallback by design — semantics are identical).
    y = jax.random.normal(k2, (2, 8, 8, 8), dtype=jnp.float32)
    outs = global_avg_pooling((x, y), concat=True)
    outs = jax.block_until_ready(outs)
    assert outs[0].shape == (2, 4)
    assert outs[1].shape == (2, 8)
    assert outs[2].shape == (2, 12)
    assert jnp.allclose(outs[0], jnp.mean(x, axis=(2, 3)), atol=1e-5, rtol=1e-5)
    assert jnp.allclose(outs[1], jnp.mean(y, axis=(2, 3)), atol=1e-5, rtol=1e-5)
    assert jnp.allclose(
        outs[2],
        jnp.concatenate([jnp.mean(x, axis=(2, 3)), jnp.mean(y, axis=(2, 3))], axis=1),
        atol=1e-5, rtol=1e-5,
    )

    # 6) Single-tensor module entry point.
    out_single = jax.block_until_ready(global_avg_pooling(x))
    assert jnp.allclose(out_single, ref, atol=1e-5, rtol=1e-5)

    print("KERNEL_OK")
</pallas_src>

<mosaic_0001>
module attributes {stable_mosaic.version = 11 : i64} {
  func.func @_gap_kernel(%arg0: i32, %arg1: i32, %arg2: i32, %arg3: memref<2x4x256xf32, #tpu.memory_space<vmem>>, %arg4: memref<2x4xf32, #tpu.memory_space<vmem>>, %arg5: memref<2x4xf32, #tpu.memory_space<vmem>>) attributes {dimension_semantics = [#tpu.dimension_semantics<parallel>, #tpu.dimension_semantics<parallel>, #tpu.dimension_semantics<arbitrary>], iteration_bounds = array<i64: 1, 1, 1>, scalar_prefetch = 0 : i64, scratch_operands = 1 : i64, tpu.core_type = #tpu.core_type<tc>, window_params = [{transform_indices = @transform_0, window_bounds = array<i64: 2, 4, 256>}, {transform_indices = @transform_1, window_bounds = array<i64: 2, 4>}]} {
    %c0_i32 = arith.constant 0 : i32
    %0 = arith.cmpi eq, %arg2, %c0_i32 : i32
    %1 = arith.extui %0 : i1 to i32
    %c0_i32_0 = arith.constant 0 : i32
    %2 = arith.cmpi ne, %1, %c0_i32_0 : i32
    scf.if %2 {
      %cst_9 = arith.constant 0.000000e+00 : f32
      %11 = vector.broadcast %cst_9 : f32 to vector<2x4xf32>
      %c0_10 = arith.constant 0 : index
      %c0_11 = arith.constant 0 : index
      %12 = vector.load %arg5[%c0_10, %c0_11] : memref<2x4xf32, #tpu.memory_space<vmem>>, vector<2x4xf32>
      tpu.vector_store %arg5[%c0_10, %c0_11], %11 {strides = array<i32>} : memref<2x4xf32, #tpu.memory_space<vmem>>, vector<2x4xf32>,
    } else {
    }
    %c0 = arith.constant 0 : index
    %c0_1 = arith.constant 0 : index
    %c0_2 = arith.constant 0 : index
    %3 = vector.load %arg3[%c0, %c0_1, %c0_2] : memref<2x4x256xf32, #tpu.memory_space<vmem>>, vector<2x4x256xf32>
    %c0_3 = arith.constant 0 : index
    %c0_4 = arith.constant 0 : index
    %4 = vector.load %arg5[%c0_3, %c0_4] : memref<2x4xf32, #tpu.memory_space<vmem>>, vector<2x4xf32>
    %cst = arith.constant dense<0.000000e+00> : vector<2x4xf32>
    %5 = vector.multi_reduction <add>, %3, %cst [2] : vector<2x4x256xf32> to vector<2x4xf32>
    %6 = arith.addf %4, %5 : vector<2x4xf32>
    %c0_5 = arith.constant 0 : index
    %c0_6 = arith.constant 0 : index
    %7 = vector.load %arg5[%c0_5, %c0_6] : memref<2x4xf32, #tpu.memory_space<vmem>>, vector<2x4xf32>
    tpu.vector_store %arg5[%c0_5, %c0_6], %6 {strides = array<i32>} : memref<2x4xf32, #tpu.memory_space<vmem>>, vector<2x4xf32>,
    %c0_i32_7 = arith.constant 0 : i32
    %8 = arith.cmpi eq, %arg2, %c0_i32_7 : i32
    %9 = arith.extui %8 : i1 to i32
    %c0_i32_8 = arith.constant 0 : i32
    %10 = arith.cmpi ne, %9, %c0_i32_8 : i32
    scf.if %10 {
      %c0_9 = arith.constant 0 : index
      %c0_10 = arith.constant 0 : index
      %11 = vector.load %arg5[%c0_9, %c0_10] : memref<2x4xf32, #tpu.memory_space<vmem>>, vector<2x4xf32>
      %cst_11 = arith.constant 3.906250e-03 : f32
      %12 = vector.broadcast %cst_11 : f32 to vector<2x4xf32>
      %13 = arith.mulf %11, %12 : vector<2x4xf32>
      %c0_12 = arith.constant 0 : index
      %c0_13 = arith.constant 0 : index
      %14 = vector.load %arg4[%c0_12, %c0_13] : memref<2x4xf32, #tpu.memory_space<vmem>>, vector<2x4xf32>
      tpu.vector_store %arg4[%c0_12, %c0_13], %13 {strides = array<i32>} : memref<2x4xf32, #tpu.memory_space<vmem>>, vector<2x4xf32>,
    } else {
    }
    return
  }
  func.func @transform_0(%arg0: i32, %arg1: i32, %arg2: i32) -> (i32, i32, i32) {
    %c0_i32 = arith.constant 0 : i32
    return %arg0, %arg1, %arg2 : i32, i32, i32
  }
  func.func @transform_1(%arg0: i32, %arg1: i32, %arg2: i32) -> (i32, i32) {
    %c0_i32 = arith.constant 0 : i32
    return %arg0, %arg1 : i32, i32
  }
}

</mosaic_0001>

<bundles_post_ra>
// kernel: tpu_custom_call.1
= control target key start
LH: loop header
LB: loop body
LE: loop exit
PB: predicated region body
PF: predicated region fallthrough
CT: control target
= control target key end

     0   :  { %6 = vsyncpa [#allocation4], 0  ;;  %s185_s0 = inlined_call_operand.hbm [shape: f32[2,4,256], index: 0, kind: input, shape index: {}]   ;;  %s186_s1 = inlined_call_operand.hbm [shape: f32[2,4], index: 1, kind: output, shape index: {}]  }
   0x1   :  { %7 = vsyncpa [#allocation5], 0  ;;  %s143_s6 = smov [#allocation3]   ;;  %s95_s10 = scalar_lea.hbm %s185_s0, 256 }
   0x2   :  { %s13_s7 = sshll.u32 %s143_s6, 4  ;;  %p96_p0 = scmp.ne.s32.totalorder %s185_s0, %s95_s10  ;;  %s14_s7 = int_to_ptr.vmem [resolvable:$true] %s13_s7 }
   0x3   :  { %p99_p1 = scmp.lt.u32.totalorder %s95_s10, %s185_s0 }
   0x5   :  { %p101_p2 = pnand %p99_p1, %p96_p0 }
   0x7   :  { %104 = shalt.err (!%p101_p2)
}
   0x8   :  { %s105_s15 = scalar_lea.vmem %s14_s7, 256  ;;  %p110_p4 = scmp.lt.s32.totalorder %s14_s7, %s14_s7 }
   0x9   :  { %p106_p3 = scmp.ne.s32.totalorder %s14_s7, %s105_s15  ;;  %p111_p5 = scmp.lt.s32.totalorder %s105_s15, %s105_s15 }
   0xb   :  { %p112_p6 = por %p111_p5, %p110_p4 }
   0xd   :  { %p113_p7 = pnand %p112_p6, %p106_p3 }
   0xf   :  { %116 = shalt.err (!%p113_p7)
}
  0x10   :  { %s144_s16 = smov 128   ;;  %s145_s17 = smov 8  }
  0x11   :  { %19 = dma.hbm_to_vmem [thread:$0]  %s185_s0, 256, %s14_s7, [#allocation4], %s144_s16, %s144_s16, %s145_s17  }
  0x12   :  { %139 = dma.done.wait [#allocation4], 256  }
  0x13   :  { %140 = vsyncadd [#allocation4], 4294967040  ;;  %vm38_vm0 = vcmask 1043456   ;;  %v29_v0 = vld [vmem:[#allocation3] sm:$0xff]  ;;  %v30_v1 = vld [vmem:[#allocation3 + $0x8] sm:$0xff]  ;;  %vm27_vm1 = vcmask 25600   ;;  %v51_v11 = vlaneseq }
  0x14   :  { %v34_v2 = vcombine.high %v29_v0, %v29_v0  ;;  %v39_v3 = vsel %vm38_vm0, %v29_v0, 0.0  ;;  %v35_v4 = vcombine.high %v30_v1, %v30_v1  ;;  %v44_v6 = vsel %vm38_vm0, %v30_v1, 0.0  ;;  %s147_s0 = smov [#allocation6]  }
  0x15   :  { %v146_v10 = vmov 0.0   ;;  %v52_v12 = vand.u32 127, %v51_v11  ;;  %v54_v13 = vshrl.u32 %v51_v11, 7  ;;  %vm61_vm2 = vcmask 1041409   ;;  %s79_s20 = sshll.u32 %s147_s0, 4  ;;  %s80_s20 = int_to_ptr.vmem [resolvable:$true] %s79_s20 }
  0x16   :  { %v40_v5 = vsel %vm38_vm0, %v34_v2, 0.0  ;;  %v45_v7 = vsel %vm38_vm0, %v35_v4, 0.0  ;;  %28 = vst.msk [vmem:[#allocation2] sm:$0x3] %vm27_vm1, %v146_v10  ;;  %s117_s21 = scalar_lea.vmem %s80_s20, 32  ;;  %p122_p9 = scmp.lt.s32.totalorder %s80_s20, %s80_s20 }
  0x17   :  { %v41_v8 = vadd.f32 %v40_v5, %v39_v3  ;;  %v46_v9 = vadd.f32 %v45_v7, %v44_v6  ;;  %v55_v15 = vsub.s32 %v52_v12, %v54_v13  ;;  %p118_p8 = scmp.ne.s32.totalorder %s80_s20, %s117_s21  ;;  %p123_p10 = scmp.lt.s32.totalorder %s117_s21, %s117_s21 }
  0x19   :  { %42 = vadd.xlane.f32.xlu0 %v41_v8  ;;  %p124_p11 = por %p123_p10, %p122_p9 }
  0x1b   :  { %p125_p12 = pnand %p124_p11, %p118_p8 }
  0x1d   :  { %47 = vadd.xlane.f32.xlu0 %v46_v9  ;;  %v31_v19 = vld [vmem:[#allocation2] sm:$0x3] }
  0xa6   :  { %v43_v14 = vpop.xlane.xlu0 %42 }
  0xa7   :  { %v56_v17 = vrot.slane %v43_v14, %v55_v15 }
  0xaa   :  { %v48_v16 = vpop.xlane.xlu0 %47 }
  0xab   :  { %v60_v18 = vrot.slane %v48_v16, %v55_v15 }
  0xad   :  { %v62_v20 = vsel %vm61_vm2, %v60_v18, %v56_v17 }
  0xae   :  { %v64_v21 = vadd.f32 %v62_v20, %v31_v19 }
  0xb0   :  { %66 = vst.msk [vmem:[#allocation2] sm:$0x3] %vm27_vm1, %v64_v21 }
  0xb7   :  { %v70_v22 = vld [vmem:[#allocation2] sm:$0x3] }
  0xb8   :  { %v71_v23 = vmul.f32 0.00390625, %v70_v22 }
  0xba   :  { %72 = vst.msk [vmem:[#allocation6] sm:$0x3] %vm27_vm1, %v71_v23 }
  0xbb   :  { %128 = shalt.err (!%p125_p12)
}
  0xbc   :  { %s129_s24 = scalar_lea.hbm %s186_s1, 32 }
  0xbd   :  { %p130_p13 = scmp.ne.s32.totalorder %s186_s1, %s129_s24  ;;  %p133_p0 = scmp.lt.u32.totalorder %s129_s24, %s186_s1 }
  0xbf   :  { %p135_p1 = pnand %p133_p0, %p130_p13 }
  0xc1   :  { %138 = shalt.err (!%p135_p1)
}
  0xc2   :  { %82 = dma.vmem_to_hbm [thread:$0]  %s80_s20, 32, %s186_s1, [#allocation5]  }
  0xc3   :  { %141 = dma.done.wait [#allocation5], 32  }
  0xc4   :  { %142 = vsyncadd [#allocation5], 4294967264 }
  0xc5   :  { %86 = vsyncpa [#allocation4], 1 }
  0xc6   :  { %87 = vsyncpa [#allocation5], 1 }

</bundles_post_ra>
